<compile_context>
chip_gen: v7x
topology: tpu7x:2x2x1
jax: 0.10.0
libtpu: 0.0.40
codegen_flags: <defaults>
</compile_context>

<pallas_src>
import numpy as np
import jax
import jax.numpy as jnp
from jax import lax
from jax.experimental import pallas as pl
from jax.experimental.pallas import tpu as pltpu


def _round_up(x, m):
    return ((x + m - 1) // m) * m


def _tree_structure(C_den_np, sub_no):
    """Effective children (PyTorch processes subunits in descending index order,
    so a child only contributes if its index is larger) and depth levels."""
    C = np.asarray(C_den_np)
    children_eff = tuple(
        tuple(int(c) for c in np.where(C[i] == 1)[0] if int(c) > i)
        for i in range(sub_no))
    level = [0] * sub_no
    for idx in range(sub_no - 1, -1, -1):
        cs = children_eff[idx]
        level[idx] = 0 if not cs else 1 + max(level[c] for c in cs)
    by_level = {}
    for idx in range(sub_no):
        by_level.setdefault(level[idx], []).append(idx)
    levels = tuple(tuple(sorted(by_level[l])) for l in sorted(by_level))
    return children_eff, levels


def _make_glm_kernel(children_eff, levels, T_no, sub_no):
    two_s = 2 * sub_no
    n_acc = 4  # independent FIR accumulators (break the serial add chain)

    def kernel(sp_ref, cf_ref, kern_ref, theta_ref, wsub_ref, vo_ref, o_ref):
        cf = cf_ref[...]                     # (2S, EI)    bf16
        kern = kern_ref[...]                 # (2S, T_no)  f32
        sp = sp_ref[0]                       # (EI, L)     bf16   L = G*SEG

        # Fused E|I synapse -> subunit projection: single MXU dot for all
        # segments in this grid step.
        syn2 = jnp.dot(cf, sp, preferred_element_type=jnp.float32)   # (2S, L)

        # Causal FIR along lanes.  Every segment starts with a PAD-lane
        # halo/zero prefix (PAD >= T_no-1), so the roll wrap and the spill
        # from the previous segment land only in discarded pad lanes:
        # no compare/select mask, just roll (XLU) + mul + add (VPU).
        n_eff = min(n_acc, T_no)
        accs = []
        for j in range(T_no):
            shifted = pltpu.roll(syn2, shift=j, axis=1) if j > 0 else syn2
            tap = shifted * kern[:, j:j + 1]
            if j < n_eff:
                accs.append(tap)             # seed accumulators from first taps
            else:
                accs[j % n_eff] = accs[j % n_eff] + tap
        filt2 = accs[0]
        for a in accs[1:]:
            filt2 = filt2 + a

        # E half + I half -> per-subunit synaptic drive (S, L).
        syn_in = filt2[:sub_no, :] + filt2[sub_no:, :]

        # Dendritic tree recurrence (leaves -> root), grouped by depth level
        # so each tanh runs on a multi-sublane slab instead of a (1, L) row.
        rows = [None] * sub_no
        for level_nodes in levels:
            pre = []
            for idx in level_nodes:
                a = syn_in[idx:idx + 1, :] + theta_ref[idx]
                for c in children_eff[idx]:
                    a = a + rows[c] * wsub_ref[c]
                pre.append(a)
            slab = pre[0] if len(pre) == 1 else jnp.concatenate(pre, axis=0)
            slab = jnp.tanh(slab)
            if len(level_nodes) == 1:
                rows[level_nodes[0]] = slab
            else:
                for i, idx in enumerate(level_nodes):
                    rows[idx] = slab[i:i + 1, :]

        o_ref[0] = rows[0] * wsub_ref[0] + vo_ref[0]     # (1, L) lane-dense

    return kernel


def glm_forward(S_e, S_i, params, C_syn_e, C_syn_i, C_den_np, T_no):
    """S_e: (B, T, E_no), S_i: (B, T, I_no)  ->  (B, T)   (matches PyTorch GLM)."""
    W_syn, Tau_syn, Delta_syn, W_sub, V_o, Theta = params
    B, T_data, E_no = S_e.shape
    I_no = S_i.shape[2]
    sub_no = C_syn_e.shape[0]
    EI = E_no + I_no
    two_s = 2 * sub_no

    # Halo length: covers the FIR lookback, rounded to a 128-lane multiple so
    # every segment (and the output) stays lane-aligned.
    PAD = _round_up(max(T_no - 1, 1), 128)

    # --- glue: build (2*sub_no, T_no) temporal filters (tiny elementwise) ----
    t_raw = jnp.arange(T_no, dtype=jnp.float32)[None, :]

    def temporal_kernel(col):
        t = jnp.maximum(t_raw - jnp.exp(Delta_syn[:, col])[:, None], 0.0)
        t_tau = t / jnp.exp(Tau_syn[:, col])[:, None]
        return t_tau * jnp.exp(-t_tau) * jnp.exp(W_syn[:, col])[:, None]

    # NOTE: PyTorch flips the kernel then uses F.conv1d (cross-correlation);
    # that equals the causal conv with the UN-flipped kernel used here.
    kern_both = jnp.concatenate([temporal_kernel(0), temporal_kernel(1)],
                                axis=0).astype(jnp.float32)        # (2S, T_no)

    # Fused block-diagonal synapse->subunit matrix: rows [E->sub ; I->sub].
    cf = jnp.zeros((two_s, EI), jnp.float32)
    cf = cf.at[:sub_no, :E_no].set(C_syn_e.astype(jnp.float32))
    cf = cf.at[sub_no:, E_no:].set(C_syn_i.astype(jnp.float32))
    cf = cf.astype(jnp.bfloat16)                                   # 0/1 -> exact

    # Per-subunit scalars -> SMEM.
    theta = Theta.reshape(sub_no).astype(jnp.float32)
    wsub_exp = jnp.exp(W_sub).reshape(sub_no).astype(jnp.float32)
    vo = V_o.reshape(1).astype(jnp.float32)

    # --- spike layout: fuse E|I, time on lanes, haloed time chunks ----------
    spikes = jnp.concatenate([S_e, S_i], axis=2).astype(jnp.bfloat16)  # (B,T,EI)
    T_pad = _round_up(T_data, 128)

    # VMEM budget -> lane budget per grid step (v7x: 64 MiB/TC, v5e/v6e: 128 MiB).
    try:
        vmem_cap = int(pltpu.get_tpu_info().vmem_capacity_bytes)
    except Exception:
        vmem_cap = 64 * 1024 * 1024
    vmem_limit = min(int(vmem_cap * 0.7), 100 * 1024 * 1024)
    tile_budget = int(vmem_limit * 0.55)
    n_acc = 4
    bytes_per_lane = (2 * EI * 2                       # bf16 spike block, double-buffered
                      + 4 * two_s * (2 + n_acc)        # syn2 + roll/tap temps + accumulators
                      + 4 * (two_s + 2 * sub_no + 4))  # filt2 / syn_in / tree rows / output
    lane_budget = max(256, min(tile_budget // bytes_per_lane, 32768))

    # Time-tile size: multiple of 128 dividing T_pad that fits the lane budget.
    TT = 128
    for cand in (16384, 8192, 4096, 2048, 1024, 512, 256, 128):
        if T_pad % cand == 0 and PAD + cand <= lane_budget:
            TT = cand
            break
    SEG = PAD + TT
    n_chunks = T_pad // TT
    n_segments = B * n_chunks

    # Build haloed chunks: (n_segments, EI, SEG).  Chunk c of a batch element
    # carries spikes for absolute times [c*TT - PAD, c*TT + TT) (zeros before 0).
    sp = jnp.pad(spikes, ((0, 0), (PAD, T_pad - T_data), (0, 0)))  # (B, PAD+T_pad, EI)
    chunks = [lax.slice_in_dim(sp, c * TT, c * TT + SEG, axis=1)
              for c in range(n_chunks)]
    segs = jnp.stack(chunks, axis=1)                   # (B, n_chunks, SEG, EI)
    segs = jnp.transpose(segs, (0, 1, 3, 2))           # (B, n_chunks, EI, SEG)
    segs = segs.reshape(n_segments, EI, SEG)

    # Segments per grid step: biggest divisor of n_segments under the lane
    # budget, preferring >= 2 grid steps (dual-TensorCore chips).
    G_cap = max(1, lane_budget // SEG)
    divisors = [d for d in range(1, n_segments + 1)
                if n_segments % d == 0 and d <= G_cap]
    pref = [d for d in divisors if n_segments // d >= 2]
    G = max(pref) if pref else max(divisors)
    n_groups = n_segments // G
    L = G * SEG

    segs = segs.reshape(n_groups, G, EI, SEG)
    segs = jnp.transpose(segs, (0, 2, 1, 3)).reshape(n_groups, EI, L)

    # C_den is a fixed (trace-time) adjacency -> unroll the tree statically.
    children_eff, levels = _tree_structure(C_den_np, sub_no)
    kernel = _make_glm_kernel(children_eff, levels, T_no, sub_no)

    out = pl.pallas_call(
        kernel,
        out_shape=jax.ShapeDtypeStruct((n_groups, 1, L), jnp.float32),
        grid_spec=pltpu.PrefetchScalarGridSpec(
            num_scalar_prefetch=0,
            grid=(n_groups,),
            in_specs=[
                pl.BlockSpec((1, EI, L), lambda g: (g, 0, 0)),
                pl.BlockSpec((two_s, EI), lambda g: (0, 0)),
                pl.BlockSpec((two_s, T_no), lambda g: (0, 0)),
                pl.BlockSpec(memory_space=pltpu.MemorySpace.SMEM),
                pl.BlockSpec(memory_space=pltpu.MemorySpace.SMEM),
                pl.BlockSpec(memory_space=pltpu.MemorySpace.SMEM),
            ],
            out_specs=pl.BlockSpec((1, 1, L), lambda g: (g, 0, 0)),
        ),
        compiler_params=pltpu.CompilerParams(
            dimension_semantics=("parallel",),
            vmem_limit_bytes=vmem_limit),
    )(segs, cf, kern_both, theta, wsub_exp, vo)

    # (n_groups, 1, G*SEG) -> (n_segments, SEG) -> drop halo -> (B, T_data).
    out = out.reshape(n_segments, SEG)[:, PAD:]
    out = out.reshape(B, n_chunks * TT)[:, :T_data]
    return out


def reference_numpy(S_e, S_i, W_syn, Tau_syn, Delta_syn, W_sub, V_o, Theta,
                    C_syn_e, C_syn_i, C_den, T_no):
    """Direct float64 numpy translation of the PyTorch forward (ground truth)."""
    S_e = np.asarray(S_e, np.float64); S_i = np.asarray(S_i, np.float64)
    C_syn_e = np.asarray(C_syn_e, np.float64); C_syn_i = np.asarray(C_syn_i, np.float64)
    W_syn = np.asarray(W_syn, np.float64); Tau_syn = np.asarray(Tau_syn, np.float64)
    Delta_syn = np.asarray(Delta_syn, np.float64); W_sub = np.asarray(W_sub, np.float64)
    V_o = np.asarray(V_o, np.float64); Theta = np.asarray(Theta, np.float64)
    C_den = np.asarray(C_den)

    B, T, _ = S_e.shape
    sub_no = C_den.shape[0]
    syn_e = S_e @ C_syn_e.T                      # (B, T, S)
    syn_i = S_i @ C_syn_i.T

    t_raw = np.arange(T_no, dtype=np.float64)[None, :]
    t_e = np.maximum(t_raw - np.exp(Delta_syn[:, 0])[:, None], 0.0)
    t_i = np.maximum(t_raw - np.exp(Delta_syn[:, 1])[:, None], 0.0)
    te_tau = t_e / np.exp(Tau_syn[:, 0])[:, None]
    ti_tau = t_i / np.exp(Tau_syn[:, 1])[:, None]
    e_kern = te_tau * np.exp(-te_tau) * np.exp(W_syn[:, 0])[:, None]   # (S, T_no)
    i_kern = ti_tau * np.exp(-ti_tau) * np.exp(W_syn[:, 1])[:, None]

    filt = np.zeros((B, T, sub_no))
    for j in range(T_no):
        filt[:, j:, :] += syn_e[:, :T - j, :] * e_kern[:, j][None, None, :]
        filt[:, j:, :] += syn_i[:, :T - j, :] * i_kern[:, j][None, None, :]

    sub_out = np.zeros((B, T, sub_no))
    for s in range(sub_no):
        idx = sub_no - 1 - s
        leaf = np.where(C_den[idx] == 1)[0]
        acc = filt[:, :, idx] + Theta[idx]
        for c in leaf:
            acc = acc + sub_out[:, :, c] * np.exp(W_sub[c])
        sub_out[:, :, idx] = np.tanh(acc)

    return sub_out[:, :, 0] * np.exp(W_sub[0]) + V_o[0]


if __name__ == "__main__":
    B, T_data, E_no, I_no, sub_no, T_no = 2, 64, 32, 24, 4, 16

    key = jax.random.PRNGKey(0)
    k1, k2, k3, k4, k5 = jax.random.split(key, 5)

    # Inputs: binary spike trains.
    S_e = jax.random.bernoulli(k1, 0.3, (B, T_data, E_no)).astype(jnp.float32)
    S_i = jax.random.bernoulli(k2, 0.3, (B, T_data, I_no)).astype(jnp.float32)

    # Fixed structural matrices (would be passed to __init__).
    e_assign = jax.random.randint(k3, (E_no,), 0, sub_no)
    i_assign = jax.random.randint(k4, (I_no,), 0, sub_no)
    C_syn_e = jax.nn.one_hot(e_assign, sub_no, dtype=jnp.float32).T   # (sub_no, E_no)
    C_syn_i = jax.nn.one_hot(i_assign, sub_no, dtype=jnp.float32).T   # (sub_no, I_no)
    C_den = np.zeros((sub_no, sub_no), dtype=np.int32)
    C_den[0, 1] = 1; C_den[0, 2] = 1; C_den[1, 3] = 1                 # small dendritic tree

    # Parameters: PyTorch __init__ values plus a small deterministic perturbation
    # so the per-subunit structure is actually exercised.
    pk = jax.random.split(k5, 6)
    W_syn = jnp.full((sub_no, 2), -3.0) + 0.1 * jax.random.normal(pk[0], (sub_no, 2))
    Tau_syn = jnp.ones((sub_no, 2)) + 0.1 * jax.random.normal(pk[1], (sub_no, 2))
    Delta_syn = jnp.full((sub_no, 2), -2.0) + 0.1 * jax.random.normal(pk[2], (sub_no, 2))
    W_sub = jnp.zeros((sub_no,)) + 0.1 * jax.random.normal(pk[3], (sub_no,))
    V_o = jnp.zeros((1,)) + 0.1 * jax.random.normal(pk[4], (1,))
    Theta = jnp.zeros((sub_no,)) + 0.1 * jax.random.normal(pk[5], (sub_no,))
    params = (W_syn.astype(jnp.float32), Tau_syn.astype(jnp.float32),
              Delta_syn.astype(jnp.float32), W_sub.astype(jnp.float32),
              V_o.astype(jnp.float32), Theta.astype(jnp.float32))

    out = glm_forward(S_e, S_i, params, C_syn_e, C_syn_i, C_den, T_no)
    out = jax.block_until_ready(out)
    assert out.shape == (B, T_data)

    ref = reference_numpy(S_e, S_i, *params, C_syn_e, C_syn_i, C_den, T_no)
    np.testing.assert_allclose(np.asarray(out), ref, rtol=2e-4, atol=2e-5)

    print("KERNEL_OK")
</pallas_src>

<mosaic_0001>
module attributes {stable_mosaic.version = 11 : i64} {
  func.func @kernel(%arg0: i32, %arg1: memref<1x56x256xbf16, #tpu.memory_space<vmem>>, %arg2: memref<8x56xbf16, #tpu.memory_space<vmem>>, %arg3: memref<8x16xf32, #tpu.memory_space<vmem>>, %arg4: memref<4xf32, #tpu.memory_space<smem>>, %arg5: memref<4xf32, #tpu.memory_space<smem>>, %arg6: memref<1xf32, #tpu.memory_space<smem>>, %arg7: memref<1x1x256xf32, #tpu.memory_space<vmem>>) attributes {dimension_semantics = [#tpu.dimension_semantics<parallel>], iteration_bounds = array<i64: 2>, scalar_prefetch = 0 : i64, scratch_operands = 0 : i64, tpu.core_type = #tpu.core_type<tc>, window_params = [{transform_indices = @transform_0, window_bounds = array<i64: 1, 56, 256>}, {pipeline_mode = #tpu.pipeline_mode<synchronous>, transform_indices = @transform_1, window_bounds = array<i64: 8, 56>}, {pipeline_mode = #tpu.pipeline_mode<synchronous>, transform_indices = @transform_2, window_bounds = array<i64: 8, 16>}, {transform_indices = @transform_3, window_bounds = array<i64: 4>}, {transform_indices = @transform_4, window_bounds = array<i64: 4>}, {transform_indices = @transform_5, window_bounds = array<i64: 1>}, {transform_indices = @transform_6, window_bounds = array<i64: 1, 1, 256>}]} {
    %c0 = arith.constant 0 : index
    %c0_0 = arith.constant 0 : index
    %0 = vector.load %arg2[%c0, %c0_0] : memref<8x56xbf16, #tpu.memory_space<vmem>>, vector<8x56xbf16>
    %c0_1 = arith.constant 0 : index
    %c0_2 = arith.constant 0 : index
    %1 = vector.load %arg3[%c0_1, %c0_2] : memref<8x16xf32, #tpu.memory_space<vmem>>, vector<8x16xf32>
    %c0_3 = arith.constant 0 : index
    %c0_4 = arith.constant 0 : index
    %c0_5 = arith.constant 0 : index
    %2 = vector.load %arg1[%c0_3, %c0_4, %c0_5] : memref<1x56x256xbf16, #tpu.memory_space<vmem>>, vector<1x56x256xbf16>
    %3 = vector.shape_cast %2 : vector<1x56x256xbf16> to vector<56x256xbf16>
    %cst = arith.constant dense<0.000000e+00> : vector<8x256xf32>
    %4 = tpu.matmul %0, %3, %cst {dimension_numbers = #tpu.dot_dimension_numbers<[1], [0], [0], [1], [0, 0, 1, 1], [], []>} : vector<8x56xbf16>, vector<56x256xbf16>, vector<8x256xf32> -> vector<8x256xf32>
    %5 = vector.extract_strided_slice %1 {offsets = [0, 0], sizes = [8, 1], strides = [1, 1]} : vector<8x16xf32> to vector<8x1xf32>
    %6 = vector.broadcast %5 : vector<8x1xf32> to vector<8x256xf32>
    %7 = arith.mulf %4, %6 : vector<8x256xf32>
    %c1_i32 = arith.constant 1 : i32
    %8 = tpu.dynamic_rotate %4 by %c1_i32 dim 1 : vector<8x256xf32>, i32 -> vector<8x256xf32>
    %9 = vector.extract_strided_slice %1 {offsets = [0, 1], sizes = [8, 1], strides = [1, 1]} : vector<8x16xf32> to vector<8x1xf32>
    %10 = vector.broadcast %9 : vector<8x1xf32> to vector<8x256xf32>
    %11 = arith.mulf %8, %10 : vector<8x256xf32>
    %c2_i32 = arith.constant 2 : i32
    %12 = tpu.dynamic_rotate %4 by %c2_i32 dim 1 : vector<8x256xf32>, i32 -> vector<8x256xf32>
    %13 = vector.extract_strided_slice %1 {offsets = [0, 2], sizes = [8, 1], strides = [1, 1]} : vector<8x16xf32> to vector<8x1xf32>
    %14 = vector.broadcast %13 : vector<8x1xf32> to vector<8x256xf32>
    %15 = arith.mulf %12, %14 : vector<8x256xf32>
    %c3_i32 = arith.constant 3 : i32
    %16 = tpu.dynamic_rotate %4 by %c3_i32 dim 1 : vector<8x256xf32>, i32 -> vector<8x256xf32>
    %17 = vector.extract_strided_slice %1 {offsets = [0, 3], sizes = [8, 1], strides = [1, 1]} : vector<8x16xf32> to vector<8x1xf32>
    %18 = vector.broadcast %17 : vector<8x1xf32> to vector<8x256xf32>
    %19 = arith.mulf %16, %18 : vector<8x256xf32>
    %c4_i32 = arith.constant 4 : i32
    %20 = tpu.dynamic_rotate %4 by %c4_i32 dim 1 : vector<8x256xf32>, i32 -> vector<8x256xf32>
    %21 = vector.extract_strided_slice %1 {offsets = [0, 4], sizes = [8, 1], strides = [1, 1]} : vector<8x16xf32> to vector<8x1xf32>
    %22 = vector.broadcast %21 : vector<8x1xf32> to vector<8x256xf32>
    %23 = arith.mulf %20, %22 : vector<8x256xf32>
    %24 = arith.addf %7, %23 : vector<8x256xf32>
    %c5_i32 = arith.constant 5 : i32
    %25 = tpu.dynamic_rotate %4 by %c5_i32 dim 1 : vector<8x256xf32>, i32 -> vector<8x256xf32>
    %26 = vector.extract_strided_slice %1 {offsets = [0, 5], sizes = [8, 1], strides = [1, 1]} : vector<8x16xf32> to vector<8x1xf32>
    %27 = vector.broadcast %26 : vector<8x1xf32> to vector<8x256xf32>
    %28 = arith.mulf %25, %27 : vector<8x256xf32>
    %29 = arith.addf %11, %28 : vector<8x256xf32>
    %c6_i32 = arith.constant 6 : i32
    %30 = tpu.dynamic_rotate %4 by %c6_i32 dim 1 : vector<8x256xf32>, i32 -> vector<8x256xf32>
    %31 = vector.extract_strided_slice %1 {offsets = [0, 6], sizes = [8, 1], strides = [1, 1]} : vector<8x16xf32> to vector<8x1xf32>
    %32 = vector.broadcast %31 : vector<8x1xf32> to vector<8x256xf32>
    %33 = arith.mulf %30, %32 : vector<8x256xf32>
    %34 = arith.addf %15, %33 : vector<8x256xf32>
    %c7_i32 = arith.constant 7 : i32
    %35 = tpu.dynamic_rotate %4 by %c7_i32 dim 1 : vector<8x256xf32>, i32 -> vector<8x256xf32>
    %36 = vector.extract_strided_slice %1 {offsets = [0, 7], sizes = [8, 1], strides = [1, 1]} : vector<8x16xf32> to vector<8x1xf32>
    %37 = vector.broadcast %36 : vector<8x1xf32> to vector<8x256xf32>
    %38 = arith.mulf %35, %37 : vector<8x256xf32>
    %39 = arith.addf %19, %38 : vector<8x256xf32>
    %c8_i32 = arith.constant 8 : i32
    %40 = tpu.dynamic_rotate %4 by %c8_i32 dim 1 : vector<8x256xf32>, i32 -> vector<8x256xf32>
    %41 = vector.extract_strided_slice %1 {offsets = [0, 8], sizes = [8, 1], strides = [1, 1]} : vector<8x16xf32> to vector<8x1xf32>
    %42 = vector.broadcast %41 : vector<8x1xf32> to vector<8x256xf32>
    %43 = arith.mulf %40, %42 : vector<8x256xf32>
    %44 = arith.addf %24, %43 : vector<8x256xf32>
    %c9_i32 = arith.constant 9 : i32
    %45 = tpu.dynamic_rotate %4 by %c9_i32 dim 1 : vector<8x256xf32>, i32 -> vector<8x256xf32>
    %46 = vector.extract_strided_slice %1 {offsets = [0, 9], sizes = [8, 1], strides = [1, 1]} : vector<8x16xf32> to vector<8x1xf32>
    %47 = vector.broadcast %46 : vector<8x1xf32> to vector<8x256xf32>
    %48 = arith.mulf %45, %47 : vector<8x256xf32>
    %49 = arith.addf %29, %48 : vector<8x256xf32>
    %c10_i32 = arith.constant 10 : i32
    %50 = tpu.dynamic_rotate %4 by %c10_i32 dim 1 : vector<8x256xf32>, i32 -> vector<8x256xf32>
    %51 = vector.extract_strided_slice %1 {offsets = [0, 10], sizes = [8, 1], strides = [1, 1]} : vector<8x16xf32> to vector<8x1xf32>
    %52 = vector.broadcast %51 : vector<8x1xf32> to vector<8x256xf32>
    %53 = arith.mulf %50, %52 : vector<8x256xf32>
    %54 = arith.addf %34, %53 : vector<8x256xf32>
    %c11_i32 = arith.constant 11 : i32
    %55 = tpu.dynamic_rotate %4 by %c11_i32 dim 1 : vector<8x256xf32>, i32 -> vector<8x256xf32>
    %56 = vector.extract_strided_slice %1 {offsets = [0, 11], sizes = [8, 1], strides = [1, 1]} : vector<8x16xf32> to vector<8x1xf32>
    %57 = vector.broadcast %56 : vector<8x1xf32> to vector<8x256xf32>
    %58 = arith.mulf %55, %57 : vector<8x256xf32>
    %59 = arith.addf %39, %58 : vector<8x256xf32>
    %c12_i32 = arith.constant 12 : i32
    %60 = tpu.dynamic_rotate %4 by %c12_i32 dim 1 : vector<8x256xf32>, i32 -> vector<8x256xf32>
    %61 = vector.extract_strided_slice %1 {offsets = [0, 12], sizes = [8, 1], strides = [1, 1]} : vector<8x16xf32> to vector<8x1xf32>
    %62 = vector.broadcast %61 : vector<8x1xf32> to vector<8x256xf32>
    %63 = arith.mulf %60, %62 : vector<8x256xf32>
    %64 = arith.addf %44, %63 : vector<8x256xf32>
    %c13_i32 = arith.constant 13 : i32
    %65 = tpu.dynamic_rotate %4 by %c13_i32 dim 1 : vector<8x256xf32>, i32 -> vector<8x256xf32>
    %66 = vector.extract_strided_slice %1 {offsets = [0, 13], sizes = [8, 1], strides = [1, 1]} : vector<8x16xf32> to vector<8x1xf32>
    %67 = vector.broadcast %66 : vector<8x1xf32> to vector<8x256xf32>
    %68 = arith.mulf %65, %67 : vector<8x256xf32>
    %69 = arith.addf %49, %68 : vector<8x256xf32>
    %c14_i32 = arith.constant 14 : i32
    %70 = tpu.dynamic_rotate %4 by %c14_i32 dim 1 : vector<8x256xf32>, i32 -> vector<8x256xf32>
    %71 = vector.extract_strided_slice %1 {offsets = [0, 14], sizes = [8, 1], strides = [1, 1]} : vector<8x16xf32> to vector<8x1xf32>
    %72 = vector.broadcast %71 : vector<8x1xf32> to vector<8x256xf32>
    %73 = arith.mulf %70, %72 : vector<8x256xf32>
    %74 = arith.addf %54, %73 : vector<8x256xf32>
    %c15_i32 = arith.constant 15 : i32
    %75 = tpu.dynamic_rotate %4 by %c15_i32 dim 1 : vector<8x256xf32>, i32 -> vector<8x256xf32>
    %76 = vector.extract_strided_slice %1 {offsets = [0, 15], sizes = [8, 1], strides = [1, 1]} : vector<8x16xf32> to vector<8x1xf32>
    %77 = vector.broadcast %76 : vector<8x1xf32> to vector<8x256xf32>
    %78 = arith.mulf %75, %77 : vector<8x256xf32>
    %79 = arith.addf %59, %78 : vector<8x256xf32>
    %80 = arith.addf %64, %69 : vector<8x256xf32>
    %81 = arith.addf %80, %74 : vector<8x256xf32>
    %82 = arith.addf %81, %79 : vector<8x256xf32>
    %83 = vector.extract_strided_slice %82 {offsets = [0, 0], sizes = [4, 256], strides = [1, 1]} : vector<8x256xf32> to vector<4x256xf32>
    %84 = vector.extract_strided_slice %82 {offsets = [4, 0], sizes = [4, 256], strides = [1, 1]} : vector<8x256xf32> to vector<4x256xf32>
    %85 = arith.addf %83, %84 : vector<4x256xf32>
    %86 = vector.extract_strided_slice %85 {offsets = [2, 0], sizes = [1, 256], strides = [1, 1]} : vector<4x256xf32> to vector<1x256xf32>
    %c2 = arith.constant 2 : index
    %87 = memref.load %arg4[%c2] : memref<4xf32, #tpu.memory_space<smem>>
    %88 = vector.broadcast %87 : f32 to vector<1x256xf32>
    %89 = arith.addf %86, %88 : vector<1x256xf32>
    %90 = vector.extract_strided_slice %85 {offsets = [3, 0], sizes = [1, 256], strides = [1, 1]} : vector<4x256xf32> to vector<1x256xf32>
    %c3 = arith.constant 3 : index
    %91 = memref.load %arg4[%c3] : memref<4xf32, #tpu.memory_space<smem>>
    %92 = vector.broadcast %91 : f32 to vector<1x256xf32>
    %93 = arith.addf %90, %92 : vector<1x256xf32>
    %94 = tpu.concatenate %89, %93 in 0 : vector<1x256xf32>, vector<1x256xf32> -> vector<2x256xf32>
    %95 = math.tanh %94 : vector<2x256xf32>
    %96 = vector.extract_strided_slice %95 {offsets = [0, 0], sizes = [1, 256], strides = [1, 1]} : vector<2x256xf32> to vector<1x256xf32>
    %97 = vector.extract_strided_slice %95 {offsets = [1, 0], sizes = [1, 256], strides = [1, 1]} : vector<2x256xf32> to vector<1x256xf32>
    %98 = vector.extract_strided_slice %85 {offsets = [1, 0], sizes = [1, 256], strides = [1, 1]} : vector<4x256xf32> to vector<1x256xf32>
    %c1 = arith.constant 1 : index
    %99 = memref.load %arg4[%c1] : memref<4xf32, #tpu.memory_space<smem>>
    %100 = vector.broadcast %99 : f32 to vector<1x256xf32>
    %101 = arith.addf %98, %100 : vector<1x256xf32>
    %c3_6 = arith.constant 3 : index
    %102 = memref.load %arg5[%c3_6] : memref<4xf32, #tpu.memory_space<smem>>
    %103 = vector.broadcast %102 : f32 to vector<1x256xf32>
    %104 = arith.mulf %97, %103 : vector<1x256xf32>
    %105 = arith.addf %101, %104 : vector<1x256xf32>
    %106 = math.tanh %105 : vector<1x256xf32>
    %107 = vector.extract_strided_slice %85 {offsets = [0, 0], sizes = [1, 256], strides = [1, 1]} : vector<4x256xf32> to vector<1x256xf32>
    %c0_7 = arith.constant 0 : index
    %108 = memref.load %arg4[%c0_7] : memref<4xf32, #tpu.memory_space<smem>>
    %109 = vector.broadcast %108 : f32 to vector<1x256xf32>
    %110 = arith.addf %107, %109 : vector<1x256xf32>
    %c1_8 = arith.constant 1 : index
    %111 = memref.load %arg5[%c1_8] : memref<4xf32, #tpu.memory_space<smem>>
    %112 = vector.broadcast %111 : f32 to vector<1x256xf32>
    %113 = arith.mulf %106, %112 : vector<1x256xf32>
    %114 = arith.addf %110, %113 : vector<1x256xf32>
    %c2_9 = arith.constant 2 : index
    %115 = memref.load %arg5[%c2_9] : memref<4xf32, #tpu.memory_space<smem>>
    %116 = vector.broadcast %115 : f32 to vector<1x256xf32>
    %117 = arith.mulf %96, %116 : vector<1x256xf32>
    %118 = arith.addf %114, %117 : vector<1x256xf32>
    %119 = math.tanh %118 : vector<1x256xf32>
    %c0_10 = arith.constant 0 : index
    %120 = memref.load %arg5[%c0_10] : memref<4xf32, #tpu.memory_space<smem>>
    %121 = vector.broadcast %120 : f32 to vector<1x256xf32>
    %122 = arith.mulf %119, %121 : vector<1x256xf32>
    %c0_11 = arith.constant 0 : index
    %123 = memref.load %arg6[%c0_11] : memref<1xf32, #tpu.memory_space<smem>>
    %124 = vector.broadcast %123 : f32 to vector<1x256xf32>
    %125 = arith.addf %122, %124 : vector<1x256xf32>
    %c0_12 = arith.constant 0 : index
    %c0_13 = arith.constant 0 : index
    %c0_14 = arith.constant 0 : index
    %126 = vector.load %arg7[%c0_12, %c0_13, %c0_14] : memref<1x1x256xf32, #tpu.memory_space<vmem>>, vector<1x1x256xf32>
    %127 = vector.shape_cast %126 : vector<1x1x256xf32> to vector<1x256xf32>
    %128 = vector.shape_cast %125 : vector<1x256xf32> to vector<1x1x256xf32>
    tpu.vector_store %arg7[%c0_12, %c0_13, %c0_14], %128 {strides = array<i32>} : memref<1x1x256xf32, #tpu.memory_space<vmem>>, vector<1x1x256xf32>,
    return
  }
  func.func @transform_0(%arg0: i32) -> (i32, i32, i32) {
    %c0_i32 = arith.constant 0 : i32
    %c0_i32_0 = arith.constant 0 : i32
    %c0_i32_1 = arith.constant 0 : i32
    return %arg0, %c0_i32, %c0_i32_0 : i32, i32, i32
  }
  func.func @transform_1(%arg0: i32) -> (i32, i32) {
    %c0_i32 = arith.constant 0 : i32
    %c0_i32_0 = arith.constant 0 : i32
    %c0_i32_1 = arith.constant 0 : i32
    return %c0_i32, %c0_i32_0 : i32, i32
  }
  func.func @transform_2(%arg0: i32) -> (i32, i32) {
    %c0_i32 = arith.constant 0 : i32
    %c0_i32_0 = arith.constant 0 : i32
    %c0_i32_1 = arith.constant 0 : i32
    return %c0_i32, %c0_i32_0 : i32, i32
  }
  func.func @transform_3(%arg0: i32) -> i32 {
    %c0_i32 = arith.constant 0 : i32
    %c0_i32_0 = arith.constant 0 : i32
    return %c0_i32 : i32
  }
  func.func @transform_4(%arg0: i32) -> i32 {
    %c0_i32 = arith.constant 0 : i32
    %c0_i32_0 = arith.constant 0 : i32
    return %c0_i32 : i32
  }
  func.func @transform_5(%arg0: i32) -> i32 {
    %c0_i32 = arith.constant 0 : i32
    %c0_i32_0 = arith.constant 0 : i32
    return %c0_i32 : i32
  }
  func.func @transform_6(%arg0: i32) -> (i32, i32, i32) {
    %c0_i32 = arith.constant 0 : i32
    %c0_i32_0 = arith.constant 0 : i32
    %c0_i32_1 = arith.constant 0 : i32
    return %arg0, %c0_i32, %c0_i32_0 : i32, i32, i32
  }
}

</mosaic_0001>

<bundles_post_ra>
// kernel: tpu_custom_call.1
= control target key start
LH: loop header
LB: loop body
LE: loop exit
PB: predicated region body
PF: predicated region fallthrough
CT: control target
= control target key end

     0   :  { %s1721_s0 = inlined_call_operand.hbm [shape: bf16[2,56,256], index: 0, kind: input, shape index: {}]   ;;  %s1722_s1 = inlined_call_operand.hbm [shape: bf16[8,56], index: 1, kind: input, shape index: {}]   ;;  %s1723_s2 = inlined_call_operand.vmem [shape: f32[8,16], index: 2, kind: input, shape index: {}]   ;;  %s1724_s3 = inlined_call_operand.vmem [shape: f32[4], index: 3, kind: input, shape index: {}]   ;;  %s1725_s4 = inlined_call_operand.vmem [shape: f32[4], index: 4, kind: input, shape index: {}]   ;;  %s1726_s5 = inlined_call_operand.<no memory space> [shape: f32[1], index: 5, kind: input, shape index: {}]   ;;  %s1727_s6 = inlined_call_operand.hbm [shape: f32[2,1,256], index: 6, kind: output, shape index: {}]  }
   0x1   :  { %11 = sst [smem:[#allocation2]] %s1726_s5 }
   0x2   :  { %12 = vsyncpa [#allocation4], 0 }
   0x3   :  { %14 = vsyncpa [#allocation4 + $0x1], 0 }
   0x4   :  { %15 = vsyncpa [#allocation8], 0 }
   0x5   :  { %16 = vsyncpa [#allocation6], 0 }
   0x6   :  { %17 = vsyncpa [#allocation11], 0 }
   0x7   :  { %18 = vsyncpa [#allocation5], 0 }
   0x8   :  { %20 = vsyncpa [#allocation5 + $0x1], 0  ;;  %s1291_s23 = smov 0   ;;  %s1293_s24 = smov 0  }
   0x9   :  { %s1295_s25 = smov 0   ;;  %s1297_s26 = smov 0  }
   0xa LB: > { %s1312_s5 = sadd.s32 4294967295, %s1212_s26   ;;  %s859_s27 = sadd.s32 4294967294, %s1212_s26   ;;  %s1212_s26 = sphi %s1297_s26, %s1751_s26   ;;  %s1208_s25 = sphi %s1295_s25, %s1750_s25   ;;  %s1204_s24 = sphi %s1293_s24, %s1749_s24   ;;  %s1200_s23 = sphi %s1291_s23, %s1748_s23  }
   0xb   : > { %p46_p0 = scmp.ne.s32.totalorder %s1204_s24, %s1200_s23  ;;  %p1728_p1 = scmp.eq.s32.totalorder %s1312_s5, 0 }
   0xc   : > { %p181_p3 = scmp.eq.s32.totalorder %s859_s27, 1  ;;  %p860_p5 = scmp.ge.s32.totalorder %s1212_s26, 1 }
   0xd   : > { %p1321_p4 = por %p1728_p1, %p46_p0  ;;  %p188_p7 = scmp.lt.s32.totalorder %s1212_s26, 3 }
   0xe   : > { %p1326_p6 = por %p181_p3, %p46_p0  ;;  %s1214_s7 = smov [#allocation7]  }
   0xf   : > { %s1731_s28 = scalar_select %p1321_p4, 1, 0 }
  0x10   : > { %s1732_s29 = scalar_select %p1326_p6, 1, 0 }
  0x11   : > { %p1331_p8 = pnand %p860_p5, %p188_p7  ;;  %s201_s8 = sshll.u32 %s1214_s7, 4  ;;  %s202_s8 = int_to_ptr.vmem [resolvable:$true] %s201_s8 }
  0x12   : > { %s215_s11 = sshll.u32 %s1724_s3, 4  ;;  %s226_s15 = sshll.u32 %s1725_s4, 4  ;;  %s1341_s11 = int_to_ptr.vmem [resolvable:$true] %s215_s11  ;;  %s1352_s15 = int_to_ptr.vmem [resolvable:$true] %s226_s15 }
  0x13   : > { %s1733_s30 = scalar_select %p1331_p8, 1, 0 }
  0x14   : > { %p912_p10 = pneg %p1331_p8  ;;  %s1046_s18 = scalar_lea.hbm %s1722_s1, 64 }
  0x15   : > { %p1047_p12 = scmp.ne.s32.totalorder %s1722_s1, %s1046_s18  ;;  %p1053_p5 = scmp.lt.u32.totalorder %s1046_s18, %s1722_s1 }
  0x16   : > { %p1345_p11 = pnand %p912_p10, %p1728_p1 }
  0x18   : > { %p1048_p13 = pneg %p1345_p11 }
  0x1a   : > { %p1049_p0 = pnand %p1048_p13, %p1047_p12 }
  0x1c   : > { %p1050_p3 = pneg %p1049_p0 }
  0x1e   : > { %p1055_p7 = pnand %p1053_p5, %p1050_p3 }
  0x20   : > { %1058 = shalt.err (!%p1055_p7)
}
  0x21   : > { %s1059_s27 = scalar_lea.vmem %s202_s8, 64  ;;  %p1067_p2 = scmp.lt.s32.totalorder %s202_s8, %s202_s8 }
  0x22   : > { %p1060_p10 = scmp.ne.s32.totalorder %s202_s8, %s1059_s27  ;;  %p1068_p6 = scmp.lt.s32.totalorder %s1059_s27, %s1059_s27 }
  0x24   : > { %p1062_p9 = pnand %p1060_p10, %p1048_p13  ;;  %p1069_p4 = por %p1068_p6, %p1067_p2 }
  0x26   : > { %p1063_p1 = pneg %p1062_p9 }
  0x28   : > { %p1070_p8 = pnand %p1069_p4, %p1063_p1 }
  0x2a   : > { %1073 = shalt.err (!%p1070_p8)
}
  0x2b   : > { %915 = dma.hbm_to_vmem [thread:$0]  (!%p1345_p11), %s1722_s1, 64, %s202_s8, [#allocation8]  }
  0x2c   : > { %s1074_s10 = scalar_lea.vmem %s1341_s11, 16  ;;  %p1082_p2 = scmp.lt.s32.totalorder %s1341_s11, %s1341_s11 }
  0x2d   : > { %p1075_p12 = scmp.ne.s32.totalorder %s1341_s11, %s1074_s10  ;;  %p1083_p1 = scmp.lt.s32.totalorder %s1074_s10, %s1074_s10 }
  0x2f   : > { %p1077_p9 = pnand %p1075_p12, %p1048_p13  ;;  %p1084_p4 = por %p1083_p1, %p1082_p2 }
  0x31   : > { %p1078_p0 = pneg %p1077_p9 }
  0x33   : > { %p1085_p6 = pnand %p1084_p4, %p1078_p0 }
  0x35   : > { %1088 = shalt.err (!%p1085_p6)
}
  0x36   : > { %s1215_s13 = smov [#allocation9]   ;;  %s1089_s8 = scalar_lea.vmem %s1352_s15, 16 }
  0x37   : > { %918 = dma.vmem_to_smem (!%p1345_p11), %s1341_s11, 16, %s1215_s13, [#allocation6]  }
  0x38   : > { %p1090_p8 = scmp.ne.s32.totalorder %s1352_s15, %s1089_s8  ;;  %p1097_p7 = scmp.lt.s32.totalorder %s1352_s15, %s1352_s15 }
  0x39   : > { %p1098_p10 = scmp.lt.s32.totalorder %s1089_s8, %s1089_s8 }
  0x3a   : > { %p1092_p3 = pnand %p1090_p8, %p1048_p13 }
  0x3b   : > { %p1099_p12 = por %p1098_p10, %p1097_p7 }
  0x3c   : > { %p1093_p5 = pneg %p1092_p3 }
  0x3e   : > { %p1100_p9 = pnand %p1099_p12, %p1093_p5 }
  0x40   : > { %1103 = shalt.err (!%p1100_p9)
}
  0x41   : > { %s1216_s14 = smov [#allocation10]   ;;  %s1397_s11 = sadd.s32 1, %s1212_s26  }
  0x42   : > { %921 = dma.vmem_to_smem (!%p1345_p11), %s1352_s15, 16, %s1216_s14, [#allocation11]  }
  0x43   : > { %s30_s16 = ssub.s32 %s1212_s26, %s1397_s11  ;;  %s33_s17 = sadd.s32 1, %s1208_s25 }
  0x44   : > { %p31_p13 = scmp.eq.s32.totalorder %s30_s16, 0  ;;  %p40_p0 = scmp.ne.s32.totalorder %s1208_s25, %s1204_s24 }
  0x45   : > { %p41_p2 = scmp.eq.s32.totalorder %s1212_s26, 0  ;;  %p933_p1 = scmp.lt.s32.totalorder %s1212_s26, 2 }
  0x46   : > { %s1407_s12 = scalar_select %p31_p13, %s1208_s25, %s33_s17  }
  0x47   : > { %p42_p4 = por %p41_p2, %p40_p0  ;;  %p1735_p6 = scmp.eq.s32.totalorder %s1312_s5, 1 }
  0x48   : > { %s240_s19 = sand.u32 1, %s1208_s25   ;;  %s894_s20 = smul.u32 896, %s1212_s26 }
  0x49   : > { %p1411_p8 = por %p1735_p6, %p40_p0  ;;  %s893_s15 = smul.u32 56, %s240_s19 }
  0x4a   : > { %s1420_s27 = scalar_lea.hbm %s1721_s0, %s894_s20  ;;  %p1422_p11 = pnand %p933_p1, %p42_p4 }
  0x4b   : > { %s244_s9 = scalar_lea.vmem [#allocation3], %s893_s15  ;;  %s1428_s13 = scalar_lea.sflag [#allocation4], %s240_s19 }
  0x4c   : > { %s251_s10 = sshll.u32 %s244_s9, 4  ;;  %s1104_s8 = scalar_lea.hbm %s1420_s27, 896  ;;  %s1426_s10 = int_to_ptr.vmem [resolvable:$true] %s251_s10 }
  0x4d   : > { %p1105_p3 = scmp.ne.s32.totalorder %s1420_s27, %s1104_s8  ;;  %p1106_p5 = pneg %p1422_p11 }
  0x4e   : > { %s1109_s17 = scalar_lea.hbm %s1721_s0, 1792  ;;  %p1110_p12 = scmp.lt.u32.totalorder %s1420_s27, %s1721_s0 }
  0x4f   : > { %p1107_p7 = pnand %p1106_p5, %p1105_p3  ;;  %p1111_p9 = scmp.lt.u32.totalorder %s1109_s17, %s1104_s8 }
  0x50   : > { %p1113_p0 = scmp.lt.u32.totalorder %s1104_s8, %s1420_s27 }
  0x51   : > { %p1108_p10 = pneg %p1107_p7  ;;  %p1112_p13 = por %p1111_p9, %p1110_p12 }
  0x53   : > { %p1114_p2 = por %p1113_p0, %p1112_p13 }
  0x55   : > { %p1115_p1 = pnand %p1114_p2, %p1108_p10 }
  0x57   : > { %1118 = shalt.err (!%p1115_p1)
}
  0x58   : > { %s1119_s19 = scalar_lea.vmem %s1426_s10, 896  ;;  %s1217_s15 = smov [#allocation3]  }
  0x59   : > { %p1120_p4 = scmp.ne.s32.totalorder %s1426_s10, %s1119_s19  ;;  %s1124_s22 = sshll.u32 %s1217_s15, 4  ;;  %s1125_s22 = int_to_ptr.vmem [resolvable:$false] %s1124_s22 }
  0x5a   : > { %s1126_s9 = scalar_lea.vmem %s1125_s22, 1792  ;;  %p1127_p7 = scmp.lt.s32.totalorder %s1426_s10, %s1125_s22 }
  0x5b   : > { %p1122_p6 = pnand %p1120_p4, %p1106_p5  ;;  %p1128_p12 = scmp.lt.s32.totalorder %s1126_s9, %s1119_s19 }
  0x5d   : > { %p1123_p3 = pneg %p1122_p6  ;;  %p1129_p9 = por %p1128_p12, %p1127_p7 }
  0x5f   : > { %p1130_p13 = pnand %p1129_p9, %p1123_p3 }
  0x61   : > { %1133 = shalt.err (!%p1130_p13)
}
  0x62   : > { %s1218_s8 = smov 128   ;;  %s1219_s14 = smov 8  }
  0x63   : > { %925 = dma.hbm_to_vmem [thread:$0]  (!%p1422_p11), %s1420_s27, 896, %s1426_s10, %s1428_s13, %s1218_s8, %s1218_s8, %s1219_s14  }
  0x64   : > { %p1738_p5 = scmp.ne.s32.totalorder %s1733_s30, 0 }
  0x65   : > { %s1459_s16 = sand.u32 (!%p1738_p5), 1, %s1204_s24   ;;  %p1739_p10 = scmp.ne.s32.totalorder (!%p1738_p5), %s1731_s28, 0 }
  0x66   : > { %263 = sbr.rel (%p1738_p5) target bundleno = 617 (0x269), region = 44  ;;  %s266_s20 = scalar_lea.sflag (!%p1738_p5), [#allocation4], %s1459_s16 }
  0x67   : > { %s895_s17 = smul.u32 (!%p1738_p5), 56, %s1459_s16 }
  0x69   : > { %s269_s21 = scalar_lea.vmem (!%p1738_p5), [#allocation3], %s895_s17 }
  0x6d   : > { %1179 = dma.done.wait (%p1739_p10), %s266_s20, 896  }
  0x6e   : > { %1181 = vsyncadd (%p1739_p10), %s266_s20, 4294966400  ;;  %p1740_p0 = scmp.eq.s32.totalorder %s1312_s5, 0 }
  0x70   : > { %1183 = dma.done.wait (%p1740_p0), [#allocation8], 64   ;;  %p1741_p11 = pmov %p1740_p0 }
  0x71   : > { %p1742_p2 = pmov %p1740_p0 }
  0x72   : > { %1185 = vsyncadd (%p1741_p11), [#allocation8], 4294967232 }
  0x73   : > { %1187 = dma.done.wait (%p1742_p2), [#allocation6], 16   ;;  %p1743_p1 = pmov %p1740_p0 }
  0x74   : > { %p1744_p4 = pmov %p1740_p0 }
  0x75   : > { %1189 = vsyncadd (%p1743_p1), [#allocation6], 4294967280 }
  0x76   : > { %1191 = dma.done.wait (%p1744_p4), [#allocation11], 16   ;;  %p1745_p6 = pmov %p1740_p0 }
  0x78   : > { %1193 = vsyncadd (%p1745_p6), [#allocation11], 4294967280 }
  0x79   : > { %286 = sfence }
  0x7a   : > { %v1023_v0 = vld [vmem:[%s269_s21 + $0x4] ss:$8 sps:$4 sm:$0xff]   ;;  %v1025_v1 = vld [vmem:[%s269_s21] ss:$8 sps:$4 sm:$0xff]   ;;  %v1220_v2 = vmov 0   ;;  %v1221_v4 = vmov 4  }
  0x7b   : > { %399 = vmatprep.mubr.bf16.mxu0 %v1220_v2  ;;  %1007 = vset.pattern.permute.xlu0 %v1220_v2  ;;  %v1026_v3 = vld [vmem:[%s269_s21 + $0x14] ss:$8 sps:$4 sm:$0xff]   ;;  %v1028_v5 = vld [vmem:[%s269_s21 + $0x10] ss:$8 sps:$4 sm:$0xff]   ;;  %v1029_v6 = vld [vmem:[%s269_s21 + $0x24] ss:$8 sps:$4 sm:$0xff]  }
  0x7c   : > { %367 = vmatprep.subr.bf16.mxu0 %v1023_v0  ;;  %1009 = vset.pattern.permute.xlu1 %v1221_v4  ;;  %v313_v7 = vld [vmem:[%s1723_s2] sm:$0xff]  ;;  %v320_v8 = vld [vmem:[%s269_s21 + $0x30] sm:$0xff]  ;;  %vm360_vm0 = vcmask 1043456   ;;  %v1222_v12 = vmov 5   ;;  %v1223_v13 = vmov 1   ;;  %v1224_v15 = vmov 2  }
  0x7d   : > { %368 = vmatpush1.bf16.msra.mxu0 %v1025_v1  ;;  %410 = vperm.xlu0 %1007, %v313_v7   ;;  %v1031_v9 = vld [vmem:[%s269_s21 + $0x20] ss:$8 sps:$4 sm:$0xff]   ;;  %v878_v10 = vcombine.high %v320_v8, %v320_v8  ;;  %v877_v11 = vcombine.low %v320_v8, %v320_v8  ;;  %v1225_v16 = vmov 6   ;;  %v312_v17 = vld [vmem:[#allocation7] sm:$0xf]  ;;  %vm356_vm1 = vcmask 457728  }
  0x7e   : > { %369 = vmatprep.subr.bf16.mxu0 %v1026_v3  ;;  %464 = vperm.xlu1 %1009, %v313_v7   ;;  %v1226_v18 = vmov 8   ;;  %v1227_v19 = vmov 3   ;;  %v1228_v20 = vmov 9   ;;  %v1229_v21 = vmov 12   ;;  %s1236_s27 = smov 6   ;;  %s1237_s7 = smov 1  }
  0x7f   : > { %v362_v14 = vsel %vm360_vm0, %v877_v11, 0  ;;  %v1230_v22 = vmov 7   ;;  %v1231_v23 = vmov 14   ;;  %v1232_v24 = vmov 10   ;;  %s1238_s10 = smov 8   ;;  %s1239_s13 = smov 4  }
  0x80   : > { %v1233_v25 = vmov 15   ;;  %v1234_v26 = vmov 13   ;;  %v1235_v27 = vmov 11   ;;  %s1240_s19 = smov 9   ;;  %s1241_s15 = smov 5   ;;  %v419_v0 = vlaneseq }
  0x81   : > { %370 = vmatpush1.bf16.msra.mxu0 %v1028_v5  ;;  %1008 = vset.pattern.permute.xlu0 %v1223_v13  ;;  %s1242_s22 = smov 7   ;;  %s1243_s9 = smov 2  }
  0x82   : > { %371 = vmatprep.subr.bf16.mxu0 %v1029_v6  ;;  %1010 = vset.pattern.permute.xlu1 %v1222_v12  ;;  %s1244_s8 = smov 10   ;;  %s1245_s14 = smov 3   ;;  %v1559_v3 = vand.u32 127, %v419_v0 }
  0x83   : > { %479 = vperm.xlu1 %1010, %v313_v7   ;;  %425 = vperm.xlu0 %1008, %v313_v7   ;;  %s1246_s17 = smov 12   ;;  %s1247_s20 = smov 13  }
  0x84   : > { %s1248_s21 = smov 11   ;;  %s1249_s28 = smov 14   ;;  %vm460_vm2 = vcmp.lt.s32.totalorder %v1559_v3, 4  ;;  %vm475_vm3 = vcmp.lt.s32.totalorder %v1559_v3, 5  ;;  %vm434_vm4 = vcmp.lt.s32.totalorder %v1559_v3, 2  ;;  %vm490_vm5 = vcmp.lt.s32.totalorder %v1559_v3, 6 }
  0x85   : > { %372 = vmatpush1.bf16.msra.mxu0 %v1031_v9  ;;  %s1250_s30 = smov 15   ;;  %vm421_vm6 = vcmp.lt.s32.totalorder %v1559_v3, 1  ;;  %vm520_vm7 = vcmp.lt.s32.totalorder %v1559_v3, 8  ;;  %vm535_vm8 = vcmp.lt.s32.totalorder %v1559_v3, 9  ;;  %vm447_vm9 = vcmp.lt.s32.totalorder %v1559_v3, 3 }
  0x86   : > { %879 = vmatprep.subr.msk.bf16.mxu0 %vm360_vm0, %v878_v10  ;;  %vm550_vm10 = vcmp.lt.s32.totalorder %v1559_v3, 10  ;;  %vm580_vm11 = vcmp.lt.s32.totalorder %v1559_v3, 12  ;;  %vm595_vm12 = vcmp.lt.s32.totalorder %v1559_v3, 13  ;;  %vm505_vm13 = vcmp.lt.s32.totalorder %v1559_v3, 7 }
  0x87   : > { %1011 = vset.pattern.permute.xlu1 %v1224_v15  ;;  %1012 = vset.pattern.permute.xlu0 %v1225_v16  ;;  %vm565_vm14 = vcmp.lt.s32.totalorder %v1559_v3, 11  ;;  %vm610_vm15 = vcmp.lt.s32.totalorder %v1559_v3, 14  ;;  %vm625_vm0 = vcmp.lt.s32.totalorder %v1559_v3, 15 }
  0x88   : > { %438 = vperm.xlu1 %1011, %v313_v7   ;;  %494 = vperm.xlu0 %1012, %v313_v7  }
  0x89   : > { %374 = vmatpush1.bf16.msra.mxu0 %v362_v14 }
  0x8c   : > { %880 = vmatmul.mubr.msk.bf16.vlgmr.msra.gmra.mrb[0].mxu0 %vm356_vm1, %v312_v17  ;;  %1013 = vset.pattern.permute.xlu1 %v1226_v18  ;;  %vm670_vm1 = vcmask 1040384  }
  0x8d   : > { %524 = vperm.xlu1 %1013, %v313_v7   ;;  %1015 = vset.pattern.permute.xlu0 %v1227_v19 }
  0x8e   : > { %451 = vperm.xlu0 %1015, %v313_v7  }
  0x91   : > { %1014 = vset.pattern.permute.xlu1 %v1228_v20 }
  0x92   : > { %539 = vperm.xlu1 %1014, %v313_v7   ;;  %1018 = vset.pattern.permute.xlu0 %v1229_v21 }
  0x93   : > { %584 = vperm.xlu0 %1018, %v313_v7  }
  0x96   : > { %1016 = vset.pattern.permute.xlu1 %v1230_v22 }
  0x97   : > { %509 = vperm.xlu1 %1016, %v313_v7   ;;  %1021 = vset.pattern.permute.xlu0 %v1231_v23 }
  0x98   : > { %614 = vperm.xlu0 %1021, %v313_v7  }
  0x9b   : > { %1017 = vset.pattern.permute.xlu1 %v1232_v24 }
  0x9c   : > { %554 = vperm.xlu1 %1017, %v313_v7   ;;  %1022 = vset.pattern.permute.xlu0 %v1233_v25 }
  0x9d   : > { %629 = vperm.xlu0 %1022, %v313_v7  }
  0xa0   : > { %1019 = vset.pattern.permute.xlu1 %v1234_v26 }
  0xa1   : > { %599 = vperm.xlu1 %1019, %v313_v7  }
  0xa5   : > { %1020 = vset.pattern.permute.xlu1 %v1235_v27 }
  0xa6   : > { %569 = vperm.xlu1 %1020, %v313_v7  }
  0xfc   : > { %v411_v35 = vpop.permute.xlu0 %410 }
  0xfd   : > { %v465_v32 = vpop.permute.xlu1 %464 }
 0x102   : > { %v1518_v33 = vpop.permute.xlu1 %479  ;;  %v1524_v37 = vpop.permute.xlu0 %425 }
 0x107   : > { %v1520_v34 = vpop.permute.xlu1 %438  ;;  %v1528_v39 = vpop.permute.xlu0 %494 }
 0x10c   : > { %v1522_v36 = vpop.permute.xlu1 %524 }
 0x10d   : > { %v1532_v41 = vpop.permute.xlu0 %451 }
 0x111   : > { %v1526_v38 = vpop.permute.xlu1 %539 }
 0x112   : > { %v1536_v43 = vpop.permute.xlu0 %584 }
 0x116   : > { %v1530_v40 = vpop.permute.xlu1 %509 }
 0x117   : > { %v1540_v45 = vpop.permute.xlu0 %614 }
 0x11b   : > { %v1534_v42 = vpop.permute.xlu1 %554 }
 0x11c   : > { %v1544_v47 = vpop.permute.xlu0 %629 }
 0x120   : > { %v1538_v44 = vpop.permute.xlu1 %599 }
 0x125   : > { %v1542_v46 = vpop.permute.xlu1 %569 }
 0x15f   : > { %v1482_v28 = vpop.f32.mrb[0].mxu0 }
 0x160   : > { %486 = vrot.lane.b32.xlu0 %v1482_v28, %s1236_s27  ;;  %415 = vrot.lane.b32.xlu1 %v1482_v28, %s1237_s7  ;;  %v1487_v29 = vpop.f32.mrb[1].mxu0  ;;  %v413_v8 = vmul.f32 %v411_v35, %v1482_v28 }
 0x161   : > { %v405_v30 = vpop.f32.mrb[2].mxu0  ;;  %v414_v11 = vmul.f32 %v411_v35, %v1487_v29 }
 0x162   : > { %v406_v31 = vpop.f32.mrb[3].mxu0 }
 0x164   : > { %516 = vrot.lane.b32.xlu0 %v1482_v28, %s1238_s10  ;;  %456 = vrot.lane.b32.xlu1 %v1482_v28, %s1239_s13 }
 0x168   : > { %531 = vrot.lane.b32.xlu0 %v1482_v28, %s1240_s19  ;;  %471 = vrot.lane.b32.xlu1 %v1482_v28, %s1241_s15 }
 0x16c   : > { %501 = vrot.lane.b32.xlu0 %v1482_v28, %s1242_s22  ;;  %430 = vrot.lane.b32.xlu1 %v1482_v28, %s1243_s9 }
 0x170   : > { %546 = vrot.lane.b32.xlu0 %v1482_v28, %s1244_s8  ;;  %443 = vrot.lane.b32.xlu1 %v1482_v28, %s1245_s14 }
 0x174   : > { %576 = vrot.lane.b32.xlu0 %v1482_v28, %s1246_s17  ;;  %432 = vrot.lane.b32.xlu1 %v1487_v29, %s1243_s9  ;;  %s711_s9 = sld [smem:[#allocation10]] }
 0x178   : > { %591 = vrot.lane.b32.xlu0 %v1482_v28, %s1247_s20  ;;  %488 = vrot.lane.b32.xlu1 %v1487_v29, %s1236_s27  ;;  %s881_s27 = sld [smem:[#allocation9 + $0x2]] }
 0x17c   : > { %561 = vrot.lane.b32.xlu0 %v1482_v28, %s1248_s21  ;;  %518 = vrot.lane.b32.xlu1 %v1487_v29, %s1238_s10  ;;  %s883_s10 = sld [smem:[#allocation9 + $0x1]] }
 0x180   : > { %533 = vrot.lane.b32.xlu1 %v1487_v29, %s1240_s19  ;;  %417 = vrot.lane.b32.xlu0 %v1487_v29, %s1237_s7  ;;  %s882_s7 = sld [smem:[#allocation9 + $0x3]]  ;;  %s885_s19 = sld [smem:[#allocation10 + $0x1]] }
 0x184   : > { %445 = vrot.lane.b32.xlu1 %v1487_v29, %s1245_s14  ;;  %458 = vrot.lane.b32.xlu0 %v1487_v29, %s1239_s13  ;;  %s884_s13 = sld [smem:[#allocation10 + $0x3]]  ;;  %s870_s14 = sshll.u32 %s1459_s16, 1 }
 0x188   : > { %503 = vrot.lane.b32.xlu1 %v1487_v29, %s1242_s22  ;;  %473 = vrot.lane.b32.xlu0 %v1487_v29, %s1241_s15  ;;  %s687_s15 = sld [smem:[#allocation9]]  ;;  %s886_s22 = sld [smem:[#allocation10 + $0x2]] }
 0x18c   : > { %548 = vrot.lane.b32.xlu1 %v1487_v29, %s1244_s8  ;;  %606 = vrot.lane.b32.xlu0 %v1482_v28, %s1249_s28  ;;  %s715_s8 = sld [smem:[#allocation2]] }
 0x190   : > { %578 = vrot.lane.b32.xlu1 %v1487_v29, %s1246_s17  ;;  %621 = vrot.lane.b32.xlu0 %v1482_v28, %s1250_s30  ;;  %s892_s17 = sshll.u32 %s1312_s5, 5  ;;  %s1252_s5 = smov [#allocation12]  }
 0x194   : > { %593 = vrot.lane.b32.xlu1 %v1487_v29, %s1247_s20  ;;  %s310_s20 = scalar_lea.vmem [#allocation12], %s870_s14 }
 0x198   : > { %563 = vrot.lane.b32.xlu1 %v1487_v29, %s1248_s21  ;;  %s757_s21 = sshll.u32 %s310_s20, 4  ;;  %s1679_s21 = int_to_ptr.vmem [resolvable:$true] %s757_s21 }
 0x19c   : > { %608 = vrot.lane.b32.xlu1 %v1487_v29, %s1249_s28 }
 0x1a0   : > { %623 = vrot.lane.b32.xlu1 %v1487_v29, %s1250_s30 }
 0x1d2   : > { %v1546_v48 = vpop.permute.xlu0 %486  ;;  %v416_v49 = vpop.permute.xlu1 %415 }
 0x1d6   : > { %v517_v50 = vpop.permute.xlu0 %516  ;;  %v457_v51 = vpop.permute.xlu1 %456 }
 0x1da   : > { %v532_v52 = vpop.permute.xlu0 %531  ;;  %v472_v53 = vpop.permute.xlu1 %471 }
 0x1de   : > { %v1548_v54 = vpop.permute.xlu0 %501  ;;  %v431_v55 = vpop.permute.xlu1 %430 }
 0x1e2   : > { %v1550_v56 = vpop.permute.xlu0 %546  ;;  %v1552_v57 = vpop.permute.xlu1 %443 }
 0x1e6   : > { %v577_v58 = vpop.permute.xlu0 %576  ;;  %v433_v59 = vpop.permute.xlu1 %432 }
 0x1e7   : > { %v435_v19 = vsel %vm434_vm4, %v431_v55, %v433_v59  ;;  %v436_v20 = vsel %vm434_vm4, %v433_v59, %v431_v55 }
 0x1ea   : > { %v1554_v60 = vpop.permute.xlu0 %591  ;;  %v489_v61 = vpop.permute.xlu1 %488 }
 0x1ee   : > { %v1556_v62 = vpop.permute.xlu0 %561  ;;  %v519_v63 = vpop.permute.xlu1 %518 }
 0x1ef   : > { %v521_v23 = vsel %vm520_vm7, %v517_v50, %v519_v63  ;;  %v522_v24 = vsel %vm520_vm7, %v519_v63, %v517_v50 }
 0x1f0   : > { %v527_v50 = vmul.f32 %v1522_v36, %v522_v24 }
 0x1f2   : > { %v534_v1 = vpop.permute.xlu1 %533  ;;  %v418_v2 = vpop.permute.xlu0 %417 }
 0x1f3   : > { %v422_v17 = vsel %vm421_vm6, %v416_v49, %v418_v2  ;;  %v423_v18 = vsel %vm421_vm6, %v418_v2, %v416_v49  ;;  %v536_v25 = vsel %vm535_vm8, %v532_v52, %v534_v1  ;;  %v537_v26 = vsel %vm535_vm8, %v534_v1, %v532_v52 }
 0x1f4   : > { %v428_v27 = vmul.f32 %v1524_v37, %v423_v18  ;;  %v429_v28 = vmul.f32 %v1524_v37, %v422_v17  ;;  %v542_v55 = vmul.f32 %v1526_v38, %v537_v26  ;;  %v543_v59 = vmul.f32 %v1526_v38, %v536_v25 }
 0x1f6   : > { %v1561_v4 = vpop.permute.xlu1 %445  ;;  %v459_v5 = vpop.permute.xlu0 %458 }
 0x1f7   : > { %v461_v9 = vsel %vm460_vm2, %v457_v51, %v459_v5  ;;  %v462_v10 = vsel %vm460_vm2, %v459_v5, %v457_v51  ;;  %v528_v51 = vmul.f32 %v1522_v36, %v521_v23  ;;  %vm739_vm2 = vcmp.lt.s32.totalorder %v419_v0, 256 }
 0x1f8   : > { %v467_v14 = vmul.f32 %v465_v32, %v462_v10  ;;  %v468_v15 = vmul.f32 %v465_v32, %v461_v9  ;;  %v441_v32 = vmul.f32 %v1520_v34, %v436_v20 }
 0x1fa   : > { %v1564_v6 = vpop.permute.xlu1 %503  ;;  %v474_v7 = vpop.permute.xlu0 %473  ;;  %v469_v29 = vadd.f32 %v467_v14, %v413_v8  ;;  %v470_v30 = vadd.f32 %v468_v15, %v414_v11 }
 0x1fb   : > { %v476_v12 = vsel %vm475_vm3, %v472_v53, %v474_v7  ;;  %v477_v13 = vsel %vm475_vm3, %v474_v7, %v472_v53  ;;  %v491_v53 = vsel %vm490_vm5, %v1546_v48, %v489_v61 }
 0x1fc   : > { %v482_v21 = vmul.f32 %v1518_v33, %v477_v13  ;;  %v483_v22 = vmul.f32 %v1518_v33, %v476_v12  ;;  %v442_v33 = vmul.f32 %v1520_v34, %v435_v19  ;;  %v492_v34 = vsel %vm490_vm5, %v489_v61, %v1546_v48 }
 0x1fd   : > { %v529_v63 = vadd.f32 %v527_v50, %v469_v29  ;;  %v497_v10 = vmul.f32 %v1528_v39, %v492_v34  ;;  %v498_v11 = vmul.f32 %v1528_v39, %v491_v53  ;;  %v506_v39 = vsel %vm505_vm13, %v1548_v54, %v1564_v6 }
 0x1fe   : > { %v549_v16 = vpop.permute.xlu1 %548  ;;  %v484_v37 = vadd.f32 %v482_v21, %v428_v27  ;;  %v485_v52 = vadd.f32 %v483_v22, %v429_v28  ;;  %v513_v24 = vmul.f32 %v1530_v40, %v506_v39 }
 0x1ff   : > { %v551_v5 = vsel %vm550_vm10, %v1550_v56, %v549_v16  ;;  %v552_v7 = vsel %vm550_vm10, %v549_v16, %v1550_v56  ;;  %v448_v56 = vsel %vm447_vm9, %v1552_v57, %v1561_v4  ;;  %v499_v20 = vadd.f32 %v497_v10, %v441_v32 }
 0x200   : > { %v544_v61 = vadd.f32 %v542_v55, %v484_v37  ;;  %v545_v8 = vadd.f32 %v543_v59, %v485_v52  ;;  %v557_v17 = vmul.f32 %v1534_v42, %v552_v7  ;;  %v558_v18 = vmul.f32 %v1534_v42, %v551_v5 }
 0x201   : > { %v500_v21 = vadd.f32 %v498_v11, %v442_v33  ;;  %v455_v42 = vmul.f32 %v1532_v41, %v448_v56  ;;  %v651_v5 = vstv %s881_s27  ;;  %v655_v7 = vstv %s882_s7  ;;  %s1677_s27 = scalar_lea.hbm %s1727_s6, %s892_s17  ;;  %s743_s7 = scalar_lea.sflag [#allocation5], %s1459_s16 }
 0x202   : > { %v579_v31 = vpop.permute.xlu1 %578  ;;  %v559_v26 = vadd.f32 %v557_v17, %v499_v20  ;;  %v688_v20 = vstv %s687_s15 }
 0x203   : > { %v581_v35 = vsel %vm580_vm11, %v577_v58, %v579_v31  ;;  %v582_v49 = vsel %vm580_vm11, %v579_v31, %v577_v58  ;;  %v530_v58 = vadd.f32 %v528_v51, %v470_v30  ;;  %v560_v27 = vadd.f32 %v558_v18, %v500_v21 }
 0x204   : > { %v587_v1 = vmul.f32 %v1536_v43, %v582_v49  ;;  %v588_v36 = vmul.f32 %v1536_v43, %v581_v35  ;;  %v515_v35 = vadd.f32 %v513_v24, %v455_v42 }
 0x206   : > { %v594_v2 = vpop.permute.xlu1 %593  ;;  %v589_v12 = vadd.f32 %v587_v1, %v529_v63  ;;  %v590_v13 = vadd.f32 %v588_v36, %v530_v58 }
 0x207   : > { %v596_v48 = vsel %vm595_vm12, %v1554_v60, %v594_v2  ;;  %v597_v38 = vsel %vm595_vm12, %v594_v2, %v1554_v60  ;;  %v449_v60 = vsel %vm447_vm9, %v1561_v4, %v1552_v57  ;;  %v607_v57 = vpop.permute.xlu0 %606 }
 0x208   : > { %v602_v43 = vmul.f32 %v1538_v44, %v597_v38  ;;  %v603_v9 = vmul.f32 %v1538_v44, %v596_v48  ;;  %v507_v44 = vsel %vm505_vm13, %v1564_v6, %v1548_v54  ;;  %v454_v6 = vmul.f32 %v1532_v41, %v449_v60 }
 0x209   : > { %v512_v23 = vmul.f32 %v1530_v40, %v507_v44 }
 0x20a   : > { %v604_v14 = vadd.f32 %v602_v43, %v544_v61  ;;  %v605_v15 = vadd.f32 %v603_v9, %v545_v8  ;;  %v564_v16 = vpop.permute.xlu1 %563 }
 0x20b   : > { %v566_v22 = vsel %vm565_vm14, %v1556_v62, %v564_v16  ;;  %v567_v54 = vsel %vm565_vm14, %v564_v16, %v1556_v62  ;;  %v514_v33 = vadd.f32 %v512_v23, %v454_v6  ;;  %v622_v41 = vpop.permute.xlu0 %621 }
 0x20c   : > { %v636_v4 = vadd.f32 %v604_v14, %v589_v12  ;;  %v637_v19 = vadd.f32 %v605_v15, %v590_v13  ;;  %v572_v30 = vmul.f32 %v1542_v46, %v567_v54  ;;  %v573_v31 = vmul.f32 %v1542_v46, %v566_v22 }
 0x20d   : > { %v676_v12 = vstv %s883_s10  ;;  %v680_v13 = vstv %s884_s13  ;;  %v704_v54 = vstv %s886_s22  ;;  %s1134_s10 = scalar_lea.vmem %s1679_s21, 32  ;;  %s1138_s13 = sshll.u32 %s1252_s5, 4  ;;  %s1139_s13 = int_to_ptr.vmem [resolvable:$false] %s1138_s13 }
 0x20e   : > { %v609_v25 = vpop.permute.xlu1 %608  ;;  %v574_v52 = vadd.f32 %v572_v30, %v514_v33  ;;  %v575_v46 = vadd.f32 %v573_v31, %v515_v35  ;;  %v712_v33 = vstv %s711_s9  ;;  %p1135_p3 = scmp.ne.s32.totalorder %s1679_s21, %s1134_s10  ;;  %p1141_p9 = scmp.lt.s32.totalorder %s1679_s21, %s1139_s13 }
 0x20f   : > { %v611_v28 = vsel %vm610_vm15, %v607_v57, %v609_v25  ;;  %v612_v29 = vsel %vm610_vm15, %v609_v25, %v607_v57 }
 0x210   : > { %v617_v32 = vmul.f32 %v1540_v45, %v612_v29  ;;  %v618_v62 = vmul.f32 %v1540_v45, %v611_v28  ;;  %p1136_p7 = pnand %p1135_p3, %p1411_p8 }
 0x212   : > { %v619_v49 = vadd.f32 %v617_v32, %v559_v26  ;;  %v620_v50 = vadd.f32 %v618_v62, %v560_v27  ;;  %v624_v51 = vpop.permute.xlu1 %623  ;;  %v1251_v32 = vmov 1966171168   ;;  %p1137_p12 = pneg %p1136_p7 }
 0x213   : > { %v626_v40 = vsel %vm625_vm0, %v622_v41, %v624_v51  ;;  %v627_v37 = vsel %vm625_vm0, %v624_v51, %v622_v41  ;;  %v723_v62 = vunpack.c.l.s4 %v1251_v32  ;;  %v716_v41 = vstv %s715_s8 }
 0x214   : > { %v632_v53 = vmul.f32 %v1544_v47, %v627_v37  ;;  %v633_v45 = vmul.f32 %v1544_v47, %v626_v40  ;;  %v638_v34 = vadd.f32 %v636_v4, %v619_v49  ;;  %v639_v55 = vadd.f32 %v637_v19, %v620_v50 }
 0x215   : > { %v692_v4 = vstv %s885_s19  ;;  %v724_v49 = vunpack.c.0.s8 %v723_v62  ;;  %v726_v50 = vshrl.u32 %v419_v0, 7  ;;  %s1140_s19 = scalar_lea.vmem %s1139_s13, 64 }
 0x216   : > { %v634_v59 = vadd.f32 %v632_v53, %v574_v52  ;;  %v635_v63 = vadd.f32 %v633_v45, %v575_v46  ;;  %p1142_p13 = scmp.lt.s32.totalorder %s1140_s19, %s1134_s10 }
 0x217   : > { %v727_v53 = vsub.s32 %v724_v49, %v726_v50 }
 0x218   : > { %v640_v58 = vadd.f32 %v638_v34, %v634_v59  ;;  %v641_v1 = vadd.f32 %v639_v55, %v635_v63  ;;  %p1143_p5 = por %p1142_p13, %p1141_p9 }
 0x21a   : > { %v644_v36 = vrot.slane %v640_v58, 4  ;;  %v645_v2 = vrot.slane %v641_v1, 4  ;;  %p1144_p10 = pnand %p1143_p5, %p1137_p12 }
 0x21c   : > { %v648_v48 = vadd.f32 %v644_v36, %v640_v58  ;;  %v649_v38 = vadd.f32 %v645_v2, %v641_v1 }
 0x21e   : > { %v652_v3 = vadd.f32 %v651_v5, %v648_v48  ;;  %v653_v61 = vadd.f32 %v651_v5, %v649_v38  ;;  %v656_v8 = vadd.f32 %v655_v7, %v648_v48  ;;  %v657_v43 = vadd.f32 %v655_v7, %v649_v38 }
 0x21f   : > { %v677_v16 = vadd.f32 %v676_v12, %v648_v48  ;;  %v678_v44 = vadd.f32 %v676_v12, %v649_v38  ;;  %v689_v42 = vadd.f32 %v688_v20, %v648_v48  ;;  %v690_v24 = vadd.f32 %v688_v20, %v649_v38 }
 0x220   : > { %v660_v9 = vrot.slane %v652_v3, 2  ;;  %v661_v10 = vrot.slane %v653_v61, 2  ;;  %v666_v47 = vrot.slane %v656_v8, 2  ;;  %v667_v11 = vrot.slane %v657_v43, 2 }
 0x222   : > { %v671_v56 = vsel %vm670_vm1, %v660_v9, %v666_v47  ;;  %v672_v60 = vsel %vm670_vm1, %v661_v10, %v667_v11 }
 0x223   : > { %1034 = vtanh.f32 %v671_v56 }
 0x224   : > { %1036 = vtanh.f32 %v672_v60 }
 0x22d   : > { %v1035_v14 = vpop.eup %1034 }
 0x22e   : > { %v1037_v15 = vpop.eup %1036  ;;  %v681_v39 = vmul.f32 %v1035_v14, %v680_v13  ;;  %v705_v27 = vmul.f32 %v1035_v14, %v704_v54 }
 0x22f   : > { %v682_v17 = vmul.f32 %v1037_v15, %v680_v13  ;;  %v706_v29 = vmul.f32 %v1037_v15, %v704_v54 }
 0x230   : > { %v683_v18 = vadd.f32 %v681_v39, %v677_v16 }
 0x231   : > { %v684_v57 = vadd.f32 %v682_v17, %v678_v44 }
 0x232   : > { %1038 = vtanh.f32 %v683_v18 }
 0x233   : > { %1040 = vtanh.f32 %v684_v57 }
 0x23c   : > { %v1039_v19 = vpop.eup %1038 }
 0x23d   : > { %v1041_v21 = vpop.eup %1040  ;;  %v693_v22 = vmul.f32 %v1039_v19, %v692_v4 }
 0x23e   : > { %v694_v6 = vmul.f32 %v1041_v21, %v692_v4 }
 0x23f   : > { %v697_v23 = vrot.slane %v693_v22, 1 }
 0x240   : > { %v698_v25 = vrot.slane %v694_v6, 1 }
 0x241   : > { %v701_v26 = vadd.f32 %v697_v23, %v689_v42 }
 0x242   : > { %v702_v28 = vadd.f32 %v698_v25, %v690_v24 }
 0x243   : > { %v707_v30 = vadd.f32 %v705_v27, %v701_v26 }
 0x244   : > { %v708_v31 = vadd.f32 %v706_v29, %v702_v28 }
 0x245   : > { %1042 = vtanh.f32 %v707_v30 }
 0x246   : > { %1044 = vtanh.f32 %v708_v31 }
 0x24f   : > { %v1043_v35 = vpop.eup %1042 }
 0x250   : > { %v1045_v51 = vpop.eup %1044  ;;  %v713_v40 = vmul.f32 %v1043_v35, %v712_v33 }
 0x251   : > { %v714_v37 = vmul.f32 %v1045_v51, %v712_v33 }
 0x252   : > { %v717_v52 = vadd.f32 %v716_v41, %v713_v40 }
 0x253   : > { %v718_v46 = vadd.f32 %v716_v41, %v714_v37 }
 0x255   : > { %v721_v45 = vcombine.low %v717_v52, %v718_v46 }
 0x257   : > { %v728_v34 = vrot.slane %v721_v45, %v727_v53 }
 0x259   : > { %v735_v55 = vrot.slane %v728_v34, %v727_v53 }
 0x25b   : > { %741 = vst.msk [vmem:[%s310_s20] sm:$0x3] %vm739_vm2, %v735_v55 }
 0x25c   : > { %1147 = shalt.err (!%p1144_p10)
}
 0x25d   : > { %s1148_s16 = scalar_lea.hbm %s1677_s27, 32  ;;  %s1152_s9 = scalar_lea.hbm %s1727_s6, 64 }
 0x25e   : > { %p1149_p0 = scmp.ne.s32.totalorder %s1677_s27, %s1148_s16  ;;  %p1153_p1 = scmp.lt.u32.totalorder %s1677_s27, %s1727_s6 }
 0x25f   : > { %p1154_p4 = scmp.lt.u32.totalorder %s1152_s9, %s1148_s16  ;;  %p1156_p3 = scmp.lt.u32.totalorder %s1148_s16, %s1677_s27 }
 0x260   : > { %p1150_p11 = pnand %p1149_p0, %p1411_p8 }
 0x261   : > { %p1155_p6 = por %p1154_p4, %p1153_p1 }
 0x262   : > { %p1151_p2 = pneg %p1150_p11 }
 0x263   : > { %p1157_p7 = por %p1156_p3, %p1155_p6 }
 0x265   : > { %p1158_p12 = pnand %p1157_p7, %p1151_p2 }
 0x267   : > { %1161 = shalt.err (!%p1158_p12)
}
 0x268   : > { %910 = dma.vmem_to_hbm [thread:$0]  (%p1411_p8), %s1679_s21, 32, %s1677_s27, %s743_s7  }
 0x269 PF: > { %s769_s17 = sand.u32 1, %s1200_s23   ;;  %p1746_p9 = scmp.ne.s32.totalorder %s1732_s29, 0 }
 0x26a   : > { %p1747_p13 = scmp.ge.s32.totalorder %s1212_s26, 2  ;;  %s770_s20 = scalar_lea.sflag [#allocation5], %s769_s17 }
 0x26c   : > { %p927_p5 = pnand %p1747_p13, %p1746_p9 }
 0x26e   : > { %1195 = dma.done.wait (!%p927_p5), %s770_s20, 32  }
 0x26f   : > { %1197 = vsyncadd (!%p927_p5), %s770_s20, 4294967264  ;;  %p23_p10 = scmp.ge.s32.totalorder %s1397_s11, 4   ;;  %s1748_s23 = smov %s1204_s24 }
 0x270   : > { %s1749_s24 = smov %s1208_s25  ;;  %s1750_s25 = smov %s1407_s12 }
 0x271   : > { %s1751_s26 = smov %s1397_s11  ;;  %25 = sbr.rel (!%p23_p10) target bundleno = 10 (0xa), region = 102 }
 0x278   :  { %775 = vsyncpa [#allocation4], 1 }
 0x279   :  { %777 = vsyncpa [#allocation4 + $0x1], 1 }
 0x27a   :  { %778 = vsyncpa [#allocation8], 1 }
 0x27b   :  { %779 = vsyncpa [#allocation5], 1 }
 0x27c   :  { %781 = vsyncpa [#allocation5 + $0x1], 1 }
 0x27d   :  { %782 = vsyncpa [#allocation6], 1 }
 0x27e   :  { %784 = vsyncpa [#allocation6 + $0x1], 1 }
 0x27f   :  { %785 = vsyncpa [#allocation11], 1 }

</bundles_post_ra>
